<compile_context>
chip_gen: v5e
topology: v5e:2x2
jax: 0.10.0
libtpu: 0.0.40
codegen_flags: <defaults>
</compile_context>

<pallas_src>
import functools

import jax
import jax.numpy as jnp
from jax.experimental import pallas as pl
from jax.experimental.pallas import tpu as pltpu


def _round_up(x: int, m: int) -> int:
    return (x + m - 1) // m * m


def mlp_kernel(x_ref, w1_ref, b1_ref, w2_ref, b2_ref, o_ref, acc_ref):
    """One (bm, bn) output tile; reduction over the hidden (k) grid axis.

    Per step:  h_k = relu(x_tile @ w1[:, k_tile] + b1[k_tile])        (MXU+VPU)
               acc += h_k @ w2[k_tile, n_tile]                         (MXU)
    ReLU is elementwise over hidden, so accumulating the second matmul over
    hidden tiles is exact.
    """
    k = pl.program_id(2)

    @pl.when(k == 0)
    def _():
        acc_ref[...] = jnp.zeros_like(acc_ref)

    # First matmul (full dim_in as contraction) -> f32, bias + ReLU in f32.
    h = jnp.dot(x_ref[...], w1_ref[...], preferred_element_type=jnp.float32)
    h = jnp.maximum(h + b1_ref[...], 0.0)

    # Partial second matmul over this hidden tile, accumulated in f32.
    acc_ref[...] += jnp.dot(
        h.astype(w2_ref.dtype), w2_ref[...], preferred_element_type=jnp.float32
    )

    @pl.when(k == pl.num_programs(2) - 1)
    def _():
        o_ref[...] = (acc_ref[...] + b2_ref[...]).astype(o_ref.dtype)


@functools.partial(jax.jit, static_argnames=("bm", "bn", "bk"))
def mlp_forward(x, w1, b1, w2, b2, *, bm=256, bn=512, bk=512):
    B, dim_in = x.shape
    hidden = w1.shape[1]
    n_out = w2.shape[1]
    assert w1.shape[0] == dim_in and w2.shape[0] == hidden
    assert b1.shape == (1, hidden) and b2.shape == (1, n_out)

    # ---- pick lane/sublane-friendly tiles, clamp to (padded) problem size ----
    bm = min(bm, _round_up(B, 128))
    bn = min(bn, _round_up(n_out, 128))
    bk = min(bk, _round_up(hidden, 128))
    K_in = _round_up(dim_in, 128)          # full (padded) dim_in kept per tile
    Bp = _round_up(B, bm)
    Np = _round_up(n_out, bn)
    Hp = _round_up(hidden, bk)

    # ---- zero-pad to tile-aligned shapes (zeros are exact: relu(0)=0, 0*w=0) ----
    xp = jnp.pad(x, ((0, Bp - B), (0, K_in - dim_in)))
    w1p = jnp.pad(w1, ((0, K_in - dim_in), (0, Hp - hidden)))
    b1p = jnp.pad(b1, ((0, 0), (0, Hp - hidden)))
    w2p = jnp.pad(w2, ((0, Hp - hidden), (0, Np - n_out)))
    b2p = jnp.pad(b2, ((0, 0), (0, Np - n_out)))

    grid = (Bp // bm, Np // bn, Hp // bk)

    # ---- explicit VMEM budget: double-buffered tiles + f32 accumulator ----
    isz = jnp.dtype(x.dtype).itemsize
    tile_bytes = (
        bm * K_in * isz       # x tile
        + K_in * bk * isz     # w1 tile
        + 8 * bk * isz        # b1 tile (pads to 8 sublanes)
        + bk * bn * isz       # w2 tile
        + 8 * bn * isz        # b2 tile
        + bm * bn * isz       # out tile
    )
    vmem_needed = 2 * tile_bytes + bm * bn * 4
    vmem_limit = max(32 << 20, int(vmem_needed * 1.25) + (2 << 20))

    flops = 2 * Bp * K_in * Hp + 2 * Bp * Hp * Np
    bytes_accessed = (
        xp.size * isz + w1p.size * isz + b1p.size * isz
        + w2p.size * isz + b2p.size * isz + Bp * Np * isz
    )

    out_padded = pl.pallas_call(
        mlp_kernel,
        out_shape=jax.ShapeDtypeStruct((Bp, Np), x.dtype),
        grid_spec=pltpu.PrefetchScalarGridSpec(
            num_scalar_prefetch=0,
            grid=grid,
            in_specs=[
                pl.BlockSpec((bm, K_in), lambda i, j, k: (i, 0)),   # x
                pl.BlockSpec((K_in, bk), lambda i, j, k: (0, k)),   # w1
                pl.BlockSpec((1, bk),    lambda i, j, k: (0, k)),   # b1
                pl.BlockSpec((bk, bn),   lambda i, j, k: (k, j)),   # w2
                pl.BlockSpec((1, bn),    lambda i, j, k: (0, j)),   # b2
            ],
            out_specs=pl.BlockSpec((bm, bn), lambda i, j, k: (i, j)),
            scratch_shapes=[pltpu.VMEM((bm, bn), jnp.float32)],
        ),
        compiler_params=pltpu.CompilerParams(
            dimension_semantics=("parallel", "parallel", "arbitrary"),
            vmem_limit_bytes=vmem_limit,
        ),
        cost_estimate=pl.CostEstimate(
            flops=flops, transcendentals=0, bytes_accessed=bytes_accessed
        ),
    )(xp, w1p, b1p, w2p, b2p)

    return out_padded[:B, :n_out]


if __name__ == "__main__":
    # Small shapes consistent with MLP(dim_in, dim_out).
    B, dim_in, dim_out = 16, 32, 64

    key = jax.random.PRNGKey(0)
    k_x, k_w1, k_w2 = jax.random.split(key, 3)

    # Deterministic param init matching the module: normal(0, 0.01) weights,
    # zero biases.
    x = jax.random.normal(k_x, (B, dim_in), dtype=jnp.float32)
    w1 = 0.01 * jax.random.normal(k_w1, (dim_in, dim_out), dtype=jnp.float32)
    b1 = jnp.zeros((1, dim_out), dtype=jnp.float32)
    w2 = 0.01 * jax.random.normal(k_w2, (dim_out, dim_out), dtype=jnp.float32)
    b2 = jnp.zeros((1, dim_out), dtype=jnp.float32)

    out = mlp_forward(x, w1, b1, w2, b2)
    out = jax.block_until_ready(out)

    # Pure-JAX reference check.
    ref = jnp.maximum(x @ w1 + b1, 0.0) @ w2 + b2
    assert out.shape == (B, dim_out)
    assert jnp.allclose(out, ref, atol=1e-5, rtol=1e-5)

    print("KERNEL_OK")
</pallas_src>

<mosaic_0001>
module attributes {stable_mosaic.version = 11 : i64} {
  func.func @mlp_kernel(%arg0: i32, %arg1: i32, %arg2: i32, %arg3: memref<128x128xf32, #tpu.memory_space<vmem>>, %arg4: memref<128x128xf32, #tpu.memory_space<vmem>>, %arg5: memref<1x128xf32, #tpu.memory_space<vmem>>, %arg6: memref<128x128xf32, #tpu.memory_space<vmem>>, %arg7: memref<1x128xf32, #tpu.memory_space<vmem>>, %arg8: memref<128x128xf32, #tpu.memory_space<vmem>>, %arg9: memref<128x128xf32, #tpu.memory_space<vmem>>) attributes {dimension_semantics = [#tpu.dimension_semantics<parallel>, #tpu.dimension_semantics<parallel>, #tpu.dimension_semantics<arbitrary>], iteration_bounds = array<i64: 1, 1, 1>, scalar_prefetch = 0 : i64, scratch_operands = 1 : i64, tpu.core_type = #tpu.core_type<tc>, window_params = [{transform_indices = @transform_0, window_bounds = array<i64: 128, 128>}, {transform_indices = @transform_1, window_bounds = array<i64: 128, 128>}, {transform_indices = @transform_2, window_bounds = array<i64: 1, 128>}, {transform_indices = @transform_3, window_bounds = array<i64: 128, 128>}, {transform_indices = @transform_4, window_bounds = array<i64: 1, 128>}, {transform_indices = @transform_5, window_bounds = array<i64: 128, 128>}]} {
    %c0_i32 = arith.constant 0 : i32
    %0 = arith.cmpi eq, %arg2, %c0_i32 : i32
    %1 = arith.extui %0 : i1 to i32
    %c0_i32_0 = arith.constant 0 : i32
    %2 = arith.cmpi ne, %1, %c0_i32_0 : i32
    scf.if %2 {
      %cst_16 = arith.constant 0.000000e+00 : f32
      %19 = vector.broadcast %cst_16 : f32 to vector<128x128xf32>
      %c0_17 = arith.constant 0 : index
      %c0_18 = arith.constant 0 : index
      %20 = vector.load %arg9[%c0_17, %c0_18] : memref<128x128xf32, #tpu.memory_space<vmem>>, vector<128x128xf32>
      tpu.vector_store %arg9[%c0_17, %c0_18], %19 {strides = array<i32>} : memref<128x128xf32, #tpu.memory_space<vmem>>, vector<128x128xf32>,
    } else {
    }
    %c0 = arith.constant 0 : index
    %c0_1 = arith.constant 0 : index
    %3 = vector.load %arg3[%c0, %c0_1] : memref<128x128xf32, #tpu.memory_space<vmem>>, vector<128x128xf32>
    %c0_2 = arith.constant 0 : index
    %c0_3 = arith.constant 0 : index
    %4 = vector.load %arg4[%c0_2, %c0_3] : memref<128x128xf32, #tpu.memory_space<vmem>>, vector<128x128xf32>
    %cst = arith.constant dense<0.000000e+00> : vector<128x128xf32>
    %5 = tpu.matmul %3, %4, %cst {dimension_numbers = #tpu.dot_dimension_numbers<[1], [0], [0], [1], [0, 0, 1, 1], [], []>} : vector<128x128xf32>, vector<128x128xf32>, vector<128x128xf32> -> vector<128x128xf32>
    %c0_4 = arith.constant 0 : index
    %c0_5 = arith.constant 0 : index
    %6 = vector.load %arg5[%c0_4, %c0_5] : memref<1x128xf32, #tpu.memory_space<vmem>>, vector<1x128xf32>
    %7 = vector.broadcast %6 : vector<1x128xf32> to vector<128x128xf32>
    %8 = arith.addf %5, %7 : vector<128x128xf32>
    %cst_6 = arith.constant 0.000000e+00 : f32
    %9 = vector.broadcast %cst_6 : f32 to vector<128x128xf32>
    %10 = arith.maximumf %8, %9 : vector<128x128xf32>
    %c0_7 = arith.constant 0 : index
    %c0_8 = arith.constant 0 : index
    %11 = vector.load %arg9[%c0_7, %c0_8] : memref<128x128xf32, #tpu.memory_space<vmem>>, vector<128x128xf32>
    %c0_9 = arith.constant 0 : index
    %c0_10 = arith.constant 0 : index
    %12 = vector.load %arg6[%c0_9, %c0_10] : memref<128x128xf32, #tpu.memory_space<vmem>>, vector<128x128xf32>
    %cst_11 = arith.constant dense<0.000000e+00> : vector<128x128xf32>
    %13 = tpu.matmul %10, %12, %cst_11 {dimension_numbers = #tpu.dot_dimension_numbers<[1], [0], [0], [1], [0, 0, 1, 1], [], []>} : vector<128x128xf32>, vector<128x128xf32>, vector<128x128xf32> -> vector<128x128xf32>
    %14 = arith.addf %11, %13 : vector<128x128xf32>
    %c0_12 = arith.constant 0 : index
    %c0_13 = arith.constant 0 : index
    %15 = vector.load %arg9[%c0_12, %c0_13] : memref<128x128xf32, #tpu.memory_space<vmem>>, vector<128x128xf32>
    tpu.vector_store %arg9[%c0_12, %c0_13], %14 {strides = array<i32>} : memref<128x128xf32, #tpu.memory_space<vmem>>, vector<128x128xf32>,
    %c0_i32_14 = arith.constant 0 : i32
    %16 = arith.cmpi eq, %arg2, %c0_i32_14 : i32
    %17 = arith.extui %16 : i1 to i32
    %c0_i32_15 = arith.constant 0 : i32
    %18 = arith.cmpi ne, %17, %c0_i32_15 : i32
    scf.if %18 {
      %c0_16 = arith.constant 0 : index
      %c0_17 = arith.constant 0 : index
      %19 = vector.load %arg9[%c0_16, %c0_17] : memref<128x128xf32, #tpu.memory_space<vmem>>, vector<128x128xf32>
      %c0_18 = arith.constant 0 : index
      %c0_19 = arith.constant 0 : index
      %20 = vector.load %arg7[%c0_18, %c0_19] : memref<1x128xf32, #tpu.memory_space<vmem>>, vector<1x128xf32>
      %21 = vector.broadcast %20 : vector<1x128xf32> to vector<128x128xf32>
      %22 = arith.addf %19, %21 : vector<128x128xf32>
      %c0_20 = arith.constant 0 : index
      %c0_21 = arith.constant 0 : index
      %23 = vector.load %arg8[%c0_20, %c0_21] : memref<128x128xf32, #tpu.memory_space<vmem>>, vector<128x128xf32>
      tpu.vector_store %arg8[%c0_20, %c0_21], %22 {strides = array<i32>} : memref<128x128xf32, #tpu.memory_space<vmem>>, vector<128x128xf32>,
    } else {
    }
    return
  }
  func.func @transform_0(%arg0: i32, %arg1: i32, %arg2: i32) -> (i32, i32) {
    %c0_i32 = arith.constant 0 : i32
    %c0_i32_0 = arith.constant 0 : i32
    return %arg0, %c0_i32 : i32, i32
  }
  func.func @transform_1(%arg0: i32, %arg1: i32, %arg2: i32) -> (i32, i32) {
    %c0_i32 = arith.constant 0 : i32
    %c0_i32_0 = arith.constant 0 : i32
    return %c0_i32, %arg2 : i32, i32
  }
  func.func @transform_2(%arg0: i32, %arg1: i32, %arg2: i32) -> (i32, i32) {
    %c0_i32 = arith.constant 0 : i32
    %c0_i32_0 = arith.constant 0 : i32
    return %c0_i32, %arg2 : i32, i32
  }
  func.func @transform_3(%arg0: i32, %arg1: i32, %arg2: i32) -> (i32, i32) {
    %c0_i32 = arith.constant 0 : i32
    return %arg2, %arg1 : i32, i32
  }
  func.func @transform_4(%arg0: i32, %arg1: i32, %arg2: i32) -> (i32, i32) {
    %c0_i32 = arith.constant 0 : i32
    %c0_i32_0 = arith.constant 0 : i32
    return %c0_i32, %arg1 : i32, i32
  }
  func.func @transform_5(%arg0: i32, %arg1: i32, %arg2: i32) -> (i32, i32) {
    %c0_i32 = arith.constant 0 : i32
    return %arg0, %arg1 : i32, i32
  }
}

</mosaic_0001>

<bundles_post_ra>
// kernel: mlp_forward.1
= control target key start
LH: loop header
LB: loop body
LE: loop exit
PB: predicated region body
PF: predicated region fallthrough
CT: control target
= control target key end

     0   :  { %s607_s1 = inlined_call_operand.vmem [shape: f32[128,128], index: 1, kind: input, shape index: {}]   ;;  %s608_s2 = inlined_call_operand.vmem [shape: f32[1,128], index: 2, kind: input, shape index: {}]   ;;  %s609_s0 = inlined_call_operand.vmem [shape: f32[128,128], index: 0, kind: input, shape index: {}]   ;;  %s610_s3 = inlined_call_operand.vmem [shape: f32[128,128], index: 3, kind: input, shape index: {}]   ;;  %s611_s4 = inlined_call_operand.vmem [shape: f32[1,128], index: 4, kind: input, shape index: {}]   ;;  %s612_s5 = inlined_call_operand.vmem [shape: f32[128,128], index: 5, kind: output, shape index: {}]  }
   0x1   :  { %v71_v0 = vld [vmem:[%s607_s1 + $0x78] sm:$0xff]  ;;  %v70_v1 = vld [vmem:[%s607_s1 + $0x70] sm:$0xff]  ;;  %v69_v2 = vld [vmem:[%s607_s1 + $0x68] sm:$0xff] }
   0x2   :  { %345 = vmatpush.msra.mxu2 %v71_v0  ;;  %76 = vmatpush.msra.mxu0 %v71_v0  ;;  %v68_v3 = vld [vmem:[%s607_s1 + $0x60] sm:$0xff]  ;;  %v67_v4 = vld [vmem:[%s607_s1 + $0x58] sm:$0xff]  ;;  %v66_v5 = vld [vmem:[%s607_s1 + $0x50] sm:$0xff] }
   0x3   :  { %v65_v6 = vld [vmem:[%s607_s1 + $0x48] sm:$0xff]  ;;  %v64_v7 = vld [vmem:[%s607_s1 + $0x40] sm:$0xff]  ;;  %v63_v8 = vld [vmem:[%s607_s1 + $0x38] sm:$0xff] }
   0x4   :  { %346 = vmatpush.msra.mxu2 %v70_v1  ;;  %77 = vmatpush.msra.mxu0 %v70_v1  ;;  %v62_v9 = vld [vmem:[%s607_s1 + $0x30] sm:$0xff]  ;;  %v61_v10 = vld [vmem:[%s607_s1 + $0x28] sm:$0xff]  ;;  %v60_v11 = vld [vmem:[%s607_s1 + $0x20] sm:$0xff] }
   0x5   :  { %v59_v12 = vld [vmem:[%s607_s1 + $0x18] sm:$0xff]  ;;  %v58_v13 = vld [vmem:[%s607_s1 + $0x10] sm:$0xff]  ;;  %v57_v14 = vld [vmem:[%s607_s1 + $0x8] sm:$0xff] }
   0x6   :  { %347 = vmatpush.msra.mxu2 %v69_v2  ;;  %78 = vmatpush.msra.mxu0 %v69_v2  ;;  %v56_v15 = vld [vmem:[%s607_s1] sm:$0xff]  ;;  %v49_v18 = vld [vmem:[%s609_s0 + $0x48] sm:$0xff]  ;;  %v50_v20 = vld [vmem:[%s609_s0 + $0x50] sm:$0xff] }
   0x7   :  { %v48_v16 = vld [vmem:[%s609_s0 + $0x40] sm:$0xff]  ;;  %v41_v19 = vld [vmem:[%s609_s0 + $0x8] sm:$0xff]  ;;  %v42_v21 = vld [vmem:[%s609_s0 + $0x10] sm:$0xff] }
   0x8   :  { %348 = vmatpush.msra.mxu2 %v68_v3  ;;  %79 = vmatpush.msra.mxu0 %v68_v3  ;;  %v40_v17 = vld [vmem:[%s609_s0] sm:$0xff]  ;;  %v51_v22 = vld [vmem:[%s609_s0 + $0x58] sm:$0xff]  ;;  %v187_v25 = vld [vmem:[%s610_s3 + $0x70] sm:$0xff] }
   0x9   :  { %v43_v23 = vld [vmem:[%s609_s0 + $0x18] sm:$0xff]  ;;  %v186_v26 = vld [vmem:[%s610_s3 + $0x68] sm:$0xff]  ;;  %v185_v27 = vld [vmem:[%s610_s3 + $0x60] sm:$0xff] }
   0xa   :  { %349 = vmatpush.msra.mxu2 %v67_v4  ;;  %80 = vmatpush.msra.mxu0 %v67_v4  ;;  %v188_v24 = vld [vmem:[%s610_s3 + $0x78] sm:$0xff]  ;;  %v52_v28 = vld [vmem:[%s609_s0 + $0x60] sm:$0xff]  ;;  %v183_v31 = vld [vmem:[%s610_s3 + $0x50] sm:$0xff] }
   0xb   :  { %361 = vmatpush.msra.mxu3 %v188_v24  ;;  %189 = vmatpush.msra.mxu1 %v188_v24  ;;  %v44_v29 = vld [vmem:[%s609_s0 + $0x20] sm:$0xff]  ;;  %v184_v30 = vld [vmem:[%s610_s3 + $0x58] sm:$0xff]  ;;  %v182_v32 = vld [vmem:[%s610_s3 + $0x48] sm:$0xff] }
   0xc   :  { %350 = vmatpush.msra.mxu2 %v66_v5  ;;  %81 = vmatpush.msra.mxu0 %v66_v5  ;;  %v181_v33 = vld [vmem:[%s610_s3 + $0x40] sm:$0xff]  ;;  %v53_v34 = vld [vmem:[%s609_s0 + $0x68] sm:$0xff]  ;;  %v180_v36 = vld [vmem:[%s610_s3 + $0x38] sm:$0xff] }
   0xd   :  { %362 = vmatpush.msra.mxu3 %v187_v25  ;;  %190 = vmatpush.msra.mxu1 %v187_v25  ;;  %v45_v35 = vld [vmem:[%s609_s0 + $0x28] sm:$0xff]  ;;  %v179_v37 = vld [vmem:[%s610_s3 + $0x30] sm:$0xff]  ;;  %v177_v39 = vld [vmem:[%s610_s3 + $0x20] sm:$0xff] }
   0xe   :  { %351 = vmatpush.msra.mxu2 %v65_v6  ;;  %82 = vmatpush.msra.mxu0 %v65_v6  ;;  %v178_v38 = vld [vmem:[%s610_s3 + $0x28] sm:$0xff]  ;;  %v54_v40 = vld [vmem:[%s609_s0 + $0x70] sm:$0xff]  ;;  %v176_v42 = vld [vmem:[%s610_s3 + $0x18] sm:$0xff] }
   0xf   :  { %363 = vmatpush.msra.mxu3 %v186_v26  ;;  %191 = vmatpush.msra.mxu1 %v186_v26  ;;  %v46_v41 = vld [vmem:[%s609_s0 + $0x30] sm:$0xff]  ;;  %v55_v43 = vld [vmem:[%s609_s0 + $0x78] sm:$0xff]  ;;  %v174_v46 = vld [vmem:[%s610_s3 + $0x8] sm:$0xff] }
  0x10   :  { %352 = vmatpush.msra.mxu2 %v64_v7  ;;  %83 = vmatpush.msra.mxu0 %v64_v7  ;;  %v47_v44 = vld [vmem:[%s609_s0 + $0x38] sm:$0xff]  ;;  %v175_v45 = vld [vmem:[%s610_s3 + $0x10] sm:$0xff]  ;;  %v173_v47 = vld [vmem:[%s610_s3] sm:$0xff] }
  0x11   :  { %364 = vmatpush.msra.mxu3 %v185_v27  ;;  %192 = vmatpush.msra.mxu1 %v185_v27  ;;  %v377_v48 = vld [vmem:[%s608_s2] ss:$0 sm:$0xff] }
  0x12   :  { %353 = vmatpush.msra.mxu2 %v63_v8  ;;  %84 = vmatpush.msra.mxu0 %v63_v8 }
  0x13   :  { %365 = vmatpush.msra.mxu3 %v184_v30  ;;  %193 = vmatpush.msra.mxu1 %v184_v30 }
  0x14   :  { %354 = vmatpush.msra.mxu2 %v62_v9  ;;  %85 = vmatpush.msra.mxu0 %v62_v9 }
  0x15   :  { %366 = vmatpush.msra.mxu3 %v183_v31  ;;  %194 = vmatpush.msra.mxu1 %v183_v31 }
  0x16   :  { %355 = vmatpush.msra.mxu2 %v61_v10  ;;  %86 = vmatpush.msra.mxu0 %v61_v10 }
  0x17   :  { %367 = vmatpush.msra.mxu3 %v182_v32  ;;  %195 = vmatpush.msra.mxu1 %v182_v32 }
  0x18   :  { %356 = vmatpush.msra.mxu2 %v60_v11  ;;  %87 = vmatpush.msra.mxu0 %v60_v11 }
  0x19   :  { %368 = vmatpush.msra.mxu3 %v181_v33  ;;  %196 = vmatpush.msra.mxu1 %v181_v33  ;;  %v378_v33 = vld [vmem:[%s611_s4] ss:$0 sm:$0xff] }
  0x1a   :  { %357 = vmatpush.msra.mxu2 %v59_v12  ;;  %88 = vmatpush.msra.mxu0 %v59_v12 }
  0x1b   :  { %369 = vmatpush.msra.mxu3 %v180_v36  ;;  %197 = vmatpush.msra.mxu1 %v180_v36 }
  0x1c   :  { %358 = vmatpush.msra.mxu2 %v58_v13  ;;  %89 = vmatpush.msra.mxu0 %v58_v13 }
  0x1d   :  { %370 = vmatpush.msra.mxu3 %v179_v37  ;;  %198 = vmatpush.msra.mxu1 %v179_v37 }
  0x1e   :  { %359 = vmatpush.msra.mxu2 %v57_v14  ;;  %90 = vmatpush.msra.mxu0 %v57_v14 }
  0x1f   :  { %371 = vmatpush.msra.mxu3 %v178_v38  ;;  %199 = vmatpush.msra.mxu1 %v178_v38 }
  0x20   :  { %360 = vmatpush.msra.mxu2 %v56_v15  ;;  %91 = vmatpush.msra.mxu0 %v56_v15 }
  0x21   :  { %116 = vmatmul.f32.vlgmr.msra.gmra.mxu2 %v48_v16  ;;  %92 = vmatmul.f32.vlgmr.msra.gmra.mxu0 %v40_v17 }
  0x22   :  { %372 = vmatpush.msra.mxu3 %v177_v39  ;;  %200 = vmatpush.msra.mxu1 %v177_v39 }
  0x24   :  { %373 = vmatpush.msra.mxu3 %v176_v42  ;;  %201 = vmatpush.msra.mxu1 %v176_v42 }
  0x26   :  { %374 = vmatpush.msra.mxu3 %v175_v45  ;;  %202 = vmatpush.msra.mxu1 %v175_v45 }
  0x28   :  { %375 = vmatpush.msra.mxu3 %v174_v46  ;;  %203 = vmatpush.msra.mxu1 %v174_v46 }
  0x29   :  { %119 = vmatmul.f32.gmra.mxu2 %v49_v18  ;;  %95 = vmatmul.f32.gmra.mxu0 %v41_v19 }
  0x2a   :  { %376 = vmatpush.msra.mxu3 %v173_v47  ;;  %204 = vmatpush.msra.mxu1 %v173_v47 }
  0x31   :  { %122 = vmatmul.f32.gmra.mxu2 %v50_v20  ;;  %98 = vmatmul.f32.gmra.mxu0 %v42_v21 }
  0x39   :  { %125 = vmatmul.f32.gmra.mxu2 %v51_v22  ;;  %101 = vmatmul.f32.gmra.mxu0 %v43_v23 }
  0x41   :  { %128 = vmatmul.f32.gmra.mxu2 %v52_v28  ;;  %104 = vmatmul.f32.gmra.mxu0 %v44_v29 }
  0x49   :  { %131 = vmatmul.f32.gmra.mxu2 %v53_v34  ;;  %107 = vmatmul.f32.gmra.mxu0 %v45_v35 }
  0x51   :  { %134 = vmatmul.f32.gmra.mxu2 %v54_v40  ;;  %110 = vmatmul.f32.gmra.mxu0 %v46_v41 }
  0x59   :  { %137 = vmatmul.f32.gmra.mxu2 %v55_v43  ;;  %113 = vmatmul.f32.gmra.mxu0 %v47_v44 }
  0x9e   :  { %v93_v49 = vpop.f32.mrf.mxu0 }
  0x9f   :  { %v94_v50 = vadd.f32 %v377_v48, %v93_v49 }
  0xa1   :  { %v141_v51 = vmax.f32 %v94_v50, 0.0 }
  0xa3   :  { %205 = vmatmul.f32.vlgmr.msra.gmra.mxu1 %v141_v51 }
  0xa4   :  { %v117_v52 = vpop.f32.mrf.mxu2 }
  0xa5   :  { %v118_v53 = vadd.f32 %v377_v48, %v117_v52 }
  0xa6   :  { %v96_v54 = vpop.f32.mrf.mxu0 }
  0xa7   :  { %v149_v55 = vmax.f32 %v118_v53, 0.0  ;;  %v97_v56 = vadd.f32 %v377_v48, %v96_v54 }
  0xa9   :  { %229 = vmatmul.f32.vlgmr.msra.gmra.mxu3 %v149_v55  ;;  %v142_v57 = vmax.f32 %v97_v56, 0.0 }
  0xab   :  { %208 = vmatmul.f32.gmra.mxu1 %v142_v57 }
  0xac   :  { %v120_v58 = vpop.f32.mrf.mxu2 }
  0xad   :  { %v121_v59 = vadd.f32 %v377_v48, %v120_v58 }
  0xae   :  { %v99_v60 = vpop.f32.mrf.mxu0 }
  0xaf   :  { %v150_v61 = vmax.f32 %v121_v59, 0.0  ;;  %v100_v62 = vadd.f32 %v377_v48, %v99_v60 }
  0xb1   :  { %232 = vmatmul.f32.gmra.mxu3 %v150_v61  ;;  %v143_v63 = vmax.f32 %v100_v62, 0.0 }
  0xb3   :  { %211 = vmatmul.f32.gmra.mxu1 %v143_v63 }
  0xb4   :  { %v123_v0 = vpop.f32.mrf.mxu2 }
  0xb5   :  { %v124_v1 = vadd.f32 %v377_v48, %v123_v0 }
  0xb6   :  { %v102_v2 = vpop.f32.mrf.mxu0 }
  0xb7   :  { %v151_v3 = vmax.f32 %v124_v1, 0.0  ;;  %v103_v4 = vadd.f32 %v377_v48, %v102_v2 }
  0xb9   :  { %235 = vmatmul.f32.gmra.mxu3 %v151_v3  ;;  %v144_v5 = vmax.f32 %v103_v4, 0.0 }
  0xbb   :  { %214 = vmatmul.f32.gmra.mxu1 %v144_v5 }
  0xbc   :  { %v126_v6 = vpop.f32.mrf.mxu2 }
  0xbd   :  { %v127_v7 = vadd.f32 %v377_v48, %v126_v6 }
  0xbe   :  { %v105_v8 = vpop.f32.mrf.mxu0 }
  0xbf   :  { %v152_v9 = vmax.f32 %v127_v7, 0.0  ;;  %v106_v10 = vadd.f32 %v377_v48, %v105_v8 }
  0xc1   :  { %238 = vmatmul.f32.gmra.mxu3 %v152_v9  ;;  %v145_v11 = vmax.f32 %v106_v10, 0.0 }
  0xc3   :  { %217 = vmatmul.f32.gmra.mxu1 %v145_v11 }
  0xc4   :  { %v129_v12 = vpop.f32.mrf.mxu2 }
  0xc5   :  { %v130_v13 = vadd.f32 %v377_v48, %v129_v12 }
  0xc6   :  { %v108_v14 = vpop.f32.mrf.mxu0 }
  0xc7   :  { %v153_v15 = vmax.f32 %v130_v13, 0.0  ;;  %v109_v16 = vadd.f32 %v377_v48, %v108_v14 }
  0xc9   :  { %241 = vmatmul.f32.gmra.mxu3 %v153_v15  ;;  %v146_v17 = vmax.f32 %v109_v16, 0.0 }
  0xcb   :  { %220 = vmatmul.f32.gmra.mxu1 %v146_v17 }
  0xcc   :  { %v132_v18 = vpop.f32.mrf.mxu2 }
  0xcd   :  { %v133_v19 = vadd.f32 %v377_v48, %v132_v18 }
  0xce   :  { %v111_v20 = vpop.f32.mrf.mxu0 }
  0xcf   :  { %v154_v21 = vmax.f32 %v133_v19, 0.0  ;;  %v112_v22 = vadd.f32 %v377_v48, %v111_v20 }
  0xd1   :  { %244 = vmatmul.f32.gmra.mxu3 %v154_v21  ;;  %v147_v23 = vmax.f32 %v112_v22, 0.0 }
  0xd3   :  { %223 = vmatmul.f32.gmra.mxu1 %v147_v23 }
  0xd4   :  { %v135_v24 = vpop.f32.mrf.mxu2 }
  0xd5   :  { %v136_v25 = vadd.f32 %v377_v48, %v135_v24 }
  0xd6   :  { %v114_v26 = vpop.f32.mrf.mxu0 }
  0xd7   :  { %v155_v27 = vmax.f32 %v136_v25, 0.0  ;;  %v115_v28 = vadd.f32 %v377_v48, %v114_v26 }
  0xd9   :  { %247 = vmatmul.f32.gmra.mxu3 %v155_v27  ;;  %v148_v29 = vmax.f32 %v115_v28, 0.0 }
  0xdb   :  { %226 = vmatmul.f32.gmra.mxu1 %v148_v29 }
  0xdc   :  { %v138_v30 = vpop.f32.mrf.mxu2 }
  0xdd   :  { %v139_v31 = vadd.f32 %v377_v48, %v138_v30 }
  0xdf   :  { %v156_v32 = vmax.f32 %v139_v31, 0.0 }
  0xe1   :  { %250 = vmatmul.f32.gmra.mxu3 %v156_v32 }
 0x120   :  { %v206_v34 = vpop.f32.mrf.mxu1 }
 0x121   :  { %v309_v35 = vadd.f32 %v378_v33, %v206_v34 }
 0x123   :  { %325 = vst [vmem:[%s612_s5] sm:$0xff] %v309_v35 }
 0x128   :  { %v209_v36 = vpop.f32.mrf.mxu1 }
 0x129   :  { %v310_v37 = vadd.f32 %v378_v33, %v209_v36 }
 0x12b   :  { %326 = vst [vmem:[%s612_s5 + $0x8] sm:$0xff] %v310_v37 }
 0x12c   :  { %v230_v38 = vpop.f32.mrf.mxu3 }
 0x12d   :  { %v317_v39 = vadd.f32 %v378_v33, %v230_v38 }
 0x12f   :  { %333 = vst [vmem:[%s612_s5 + $0x40] sm:$0xff] %v317_v39 }
 0x130   :  { %v212_v40 = vpop.f32.mrf.mxu1 }
 0x131   :  { %v311_v41 = vadd.f32 %v378_v33, %v212_v40 }
 0x133   :  { %327 = vst [vmem:[%s612_s5 + $0x10] sm:$0xff] %v311_v41 }
 0x134   :  { %v233_v42 = vpop.f32.mrf.mxu3 }
 0x135   :  { %v318_v43 = vadd.f32 %v378_v33, %v233_v42 }
 0x137   :  { %334 = vst [vmem:[%s612_s5 + $0x48] sm:$0xff] %v318_v43 }
 0x138   :  { %v215_v44 = vpop.f32.mrf.mxu1 }
 0x139   :  { %v312_v45 = vadd.f32 %v378_v33, %v215_v44 }
 0x13b   :  { %328 = vst [vmem:[%s612_s5 + $0x18] sm:$0xff] %v312_v45 }
 0x13c   :  { %v236_v46 = vpop.f32.mrf.mxu3 }
 0x13d   :  { %v319_v47 = vadd.f32 %v378_v33, %v236_v46 }
 0x13f   :  { %335 = vst [vmem:[%s612_s5 + $0x50] sm:$0xff] %v319_v47 }
 0x140   :  { %v218_v48 = vpop.f32.mrf.mxu1 }
 0x141   :  { %v313_v49 = vadd.f32 %v378_v33, %v218_v48 }
 0x143   :  { %329 = vst [vmem:[%s612_s5 + $0x20] sm:$0xff] %v313_v49 }
 0x144   :  { %v239_v50 = vpop.f32.mrf.mxu3 }
 0x145   :  { %v320_v51 = vadd.f32 %v378_v33, %v239_v50 }
 0x147   :  { %336 = vst [vmem:[%s612_s5 + $0x58] sm:$0xff] %v320_v51 }
 0x148   :  { %v221_v52 = vpop.f32.mrf.mxu1 }
 0x149   :  { %v314_v53 = vadd.f32 %v378_v33, %v221_v52 }
 0x14b   :  { %330 = vst [vmem:[%s612_s5 + $0x28] sm:$0xff] %v314_v53 }
 0x14c   :  { %v242_v54 = vpop.f32.mrf.mxu3 }
 0x14d   :  { %v321_v55 = vadd.f32 %v378_v33, %v242_v54 }
 0x14f   :  { %337 = vst [vmem:[%s612_s5 + $0x60] sm:$0xff] %v321_v55 }
 0x150   :  { %v224_v56 = vpop.f32.mrf.mxu1 }
 0x151   :  { %v315_v57 = vadd.f32 %v378_v33, %v224_v56 }
 0x153   :  { %331 = vst [vmem:[%s612_s5 + $0x30] sm:$0xff] %v315_v57 }
 0x154   :  { %v245_v58 = vpop.f32.mrf.mxu3 }
 0x155   :  { %v322_v59 = vadd.f32 %v378_v33, %v245_v58 }
 0x157   :  { %338 = vst [vmem:[%s612_s5 + $0x68] sm:$0xff] %v322_v59 }
 0x158   :  { %v227_v60 = vpop.f32.mrf.mxu1 }
 0x159   :  { %v316_v61 = vadd.f32 %v378_v33, %v227_v60 }
 0x15b   :  { %332 = vst [vmem:[%s612_s5 + $0x38] sm:$0xff] %v316_v61 }
 0x15c   :  { %v248_v62 = vpop.f32.mrf.mxu3 }
 0x15d   :  { %v323_v63 = vadd.f32 %v378_v33, %v248_v62 }
 0x15f   :  { %339 = vst [vmem:[%s612_s5 + $0x70] sm:$0xff] %v323_v63 }
 0x164   :  { %v251_v0 = vpop.f32.mrf.mxu3 }
 0x165   :  { %v324_v1 = vadd.f32 %v378_v33, %v251_v0 }
 0x167   :  { %340 = vst [vmem:[%s612_s5 + $0x78] sm:$0xff] %v324_v1 }

</bundles_post_ra>
